<compile_context>
chip_gen: v6e
topology: v6e:2x2x1
jax: 0.10.0
libtpu: 0.0.40
codegen_flags: <defaults>
</compile_context>

<pallas_src>
import numpy as np

import jax
import jax.numpy as jnp
from jax.experimental import pallas as pl
from jax.experimental.pallas import tpu as pltpu

_MAX_TILE_ROWS = 1024            # up to (1024, 512) f32 = 2 MiB per tile
_LANE_CHOICES = (512, 256, 128)  # lane-dense widths (multiples of 128)


def _cdiv(a: int, b: int) -> int:
    return -(-a // b)


def _scale3_kernel(w_ref, f0_ref, f1_ref, f2_ref, o0_ref, o1_ref, o2_ref):
    # w_ref: (3,) f32 softmaxed scale weights, resident in SMEM.
    # f*/o*: lane-dense VMEM tiles.  Pure VPU multiply; the scalar weight is a
    # free sreg->vreg splat.  All three outputs are rewritten every step so
    # clamped (resident) blocks always contain correct data regardless of how
    # the grid axis is split across cores; the redundant VMEM work is hidden
    # under the HBM DMAs.
    o0_ref[...] = (f0_ref[...].astype(jnp.float32) * w_ref[0]).astype(o0_ref.dtype)
    o1_ref[...] = (f1_ref[...].astype(jnp.float32) * w_ref[1]).astype(o1_ref.dtype)
    o2_ref[...] = (f2_ref[...].astype(jnp.float32) * w_ref[2]).astype(o2_ref.dtype)


def _to_slab(f):
    """View `f` as a lane-dense (rows, lane) 2-D array.

    Copy-free when the element count divides a supported lane width; falls
    back to padding the flat vector to a 128-lane multiple (one copy, rare).
    Returns (slab, lane, n_elements).
    """
    n = int(np.prod(f.shape))
    for lane in _LANE_CHOICES:
        if n % lane == 0:
            return f.reshape(n // lane, lane), lane, n
    lane = _LANE_CHOICES[-1]
    rows = _cdiv(n, lane)
    flat = jnp.pad(f.reshape(-1), (0, rows * lane - n))
    return flat.reshape(rows, lane), lane, n


@jax.jit
def cross_scale_attention(attention_weights, f0, f1, f2):
    """JAX/Pallas equivalent of CrossScaleAttention.forward([f0, f1, f2])."""
    features = (f0, f1, f2)

    # 3-element softmax computed once in the wrapper, kept in f32 so the
    # in-kernel multiply matches PyTorch's parameter-dtype promotion.
    w = jax.nn.softmax(attention_weights.astype(jnp.float32), axis=0)

    slabs = [_to_slab(f) for f in features]

    # Per-scale row tiling.  tile_rows is either the full row count (single
    # tile; "full array dim" layout exemption, so any dtype packing is fine)
    # or _MAX_TILE_ROWS (multiple of 8/16/32, so f32/bf16/int8 all pack).
    tile_rows, num_tiles = [], []
    for slab, _, _ in slabs:
        rows = slab.shape[0]
        tr = min(_MAX_TILE_ROWS, rows)
        tile_rows.append(tr)
        num_tiles.append(_cdiv(rows, tr))
    grid = (max(num_tiles),)

    def make_imap(n_tiles):
        last = n_tiles - 1
        if n_tiles == grid[0]:
            return lambda g: (g, 0)
        # Scales with fewer tiles stay clamped on their last block; Pallas
        # skips re-DMAing blocks whose index does not change.
        return lambda g: (jnp.minimum(g, last), 0)

    in_specs = [pl.BlockSpec(memory_space=pltpu.MemorySpace.SMEM)]  # weights
    out_specs = []
    for (slab, lane, _), tr, nt in zip(slabs, tile_rows, num_tiles):
        in_specs.append(pl.BlockSpec((tr, lane), make_imap(nt)))
        out_specs.append(pl.BlockSpec((tr, lane), make_imap(nt)))

    out_shapes = tuple(
        jax.ShapeDtypeStruct(slab.shape, f.dtype)
        for (slab, _, _), f in zip(slabs, features)
    )

    outs2d = pl.pallas_call(
        _scale3_kernel,
        out_shape=out_shapes,
        grid=grid,
        in_specs=in_specs,
        out_specs=out_specs,
        compiler_params=pltpu.CompilerParams(
            dimension_semantics=("parallel",),
            # 3 inputs + 3 outputs, double-buffered, up to 2 MiB tiles
            # -> <= 24 MiB; raise v5e's 16 MiB default, stay within v7x's
            # 32 MiB default / 64 MiB physical.
            vmem_limit_bytes=32 * 1024 * 1024,
        ),
    )(w, *[slab for slab, _, _ in slabs])

    # Restore original shapes (pure views unless the rare pad path was hit).
    results = []
    for o2d, (_, _, n), f in zip(outs2d, slabs, features):
        if o2d.size != n:
            o2d = o2d.reshape(-1)[:n]
        results.append(o2d.reshape(f.shape))
    return tuple(results)


def _reference(attention_weights, features):
    w = jax.nn.softmax(attention_weights, axis=0)
    return [f * w[i] for i, f in enumerate(features)]


if __name__ == "__main__":
    key = jax.random.PRNGKey(0)
    k0, k1, k2 = jax.random.split(key, 3)

    # Parameter init exactly as in __init__: nn.Parameter(torch.ones(3))
    attention_weights = jnp.ones((3,), dtype=jnp.float32)

    # Three FPN-style feature maps at different scales (NCHW).
    f0 = jax.random.normal(k0, (2, 4, 16, 16), dtype=jnp.float32)
    f1 = jax.random.normal(k1, (2, 8, 8, 8), dtype=jnp.float32)
    f2 = jax.random.normal(k2, (2, 16, 4, 4), dtype=jnp.float32)

    outs = cross_scale_attention(attention_weights, f0, f1, f2)
    outs = jax.block_until_ready(outs)

    refs = _reference(attention_weights, [f0, f1, f2])
    for o, r in zip(outs, refs):
        assert o.shape == r.shape and o.dtype == r.dtype
        assert jnp.max(jnp.abs(o - r)) < 1e-6

    print("KERNEL_OK")
</pallas_src>

<mosaic_0001>
module attributes {stable_mosaic.version = 11 : i64} {
  func.func @_scale3_kernel(%arg0: i32, %arg1: memref<3xf32, #tpu.memory_space<smem>>, %arg2: memref<4x512xf32, #tpu.memory_space<vmem>>, %arg3: memref<2x512xf32, #tpu.memory_space<vmem>>, %arg4: memref<1x512xf32, #tpu.memory_space<vmem>>, %arg5: memref<4x512xf32, #tpu.memory_space<vmem>>, %arg6: memref<2x512xf32, #tpu.memory_space<vmem>>, %arg7: memref<1x512xf32, #tpu.memory_space<vmem>>) attributes {dimension_semantics = [#tpu.dimension_semantics<parallel>], iteration_bounds = array<i64: 1>, scalar_prefetch = 0 : i64, scratch_operands = 0 : i64, tpu.core_type = #tpu.core_type<tc>, window_params = [{transform_indices = @transform_0, window_bounds = array<i64: 3>}, {transform_indices = @transform_1, window_bounds = array<i64: 4, 512>}, {transform_indices = @transform_2, window_bounds = array<i64: 2, 512>}, {transform_indices = @transform_3, window_bounds = array<i64: 1, 512>}, {transform_indices = @transform_4, window_bounds = array<i64: 4, 512>}, {transform_indices = @transform_5, window_bounds = array<i64: 2, 512>}, {transform_indices = @transform_6, window_bounds = array<i64: 1, 512>}]} {
    %c0 = arith.constant 0 : index
    %c0_0 = arith.constant 0 : index
    %0 = vector.load %arg2[%c0, %c0_0] : memref<4x512xf32, #tpu.memory_space<vmem>>, vector<4x512xf32>
    %c0_1 = arith.constant 0 : index
    %1 = memref.load %arg1[%c0_1] : memref<3xf32, #tpu.memory_space<smem>>
    %2 = vector.broadcast %1 : f32 to vector<4x512xf32>
    %3 = arith.mulf %0, %2 : vector<4x512xf32>
    %c0_2 = arith.constant 0 : index
    %c0_3 = arith.constant 0 : index
    %4 = vector.load %arg5[%c0_2, %c0_3] : memref<4x512xf32, #tpu.memory_space<vmem>>, vector<4x512xf32>
    tpu.vector_store %arg5[%c0_2, %c0_3], %3 {strides = array<i32>} : memref<4x512xf32, #tpu.memory_space<vmem>>, vector<4x512xf32>,
    %c0_4 = arith.constant 0 : index
    %c0_5 = arith.constant 0 : index
    %5 = vector.load %arg3[%c0_4, %c0_5] : memref<2x512xf32, #tpu.memory_space<vmem>>, vector<2x512xf32>
    %c1 = arith.constant 1 : index
    %6 = memref.load %arg1[%c1] : memref<3xf32, #tpu.memory_space<smem>>
    %7 = vector.broadcast %6 : f32 to vector<2x512xf32>
    %8 = arith.mulf %5, %7 : vector<2x512xf32>
    %c0_6 = arith.constant 0 : index
    %c0_7 = arith.constant 0 : index
    %9 = vector.load %arg6[%c0_6, %c0_7] : memref<2x512xf32, #tpu.memory_space<vmem>>, vector<2x512xf32>
    tpu.vector_store %arg6[%c0_6, %c0_7], %8 {strides = array<i32>} : memref<2x512xf32, #tpu.memory_space<vmem>>, vector<2x512xf32>,
    %c0_8 = arith.constant 0 : index
    %c0_9 = arith.constant 0 : index
    %10 = vector.load %arg4[%c0_8, %c0_9] : memref<1x512xf32, #tpu.memory_space<vmem>>, vector<1x512xf32>
    %c2 = arith.constant 2 : index
    %11 = memref.load %arg1[%c2] : memref<3xf32, #tpu.memory_space<smem>>
    %12 = vector.broadcast %11 : f32 to vector<1x512xf32>
    %13 = arith.mulf %10, %12 : vector<1x512xf32>
    %c0_10 = arith.constant 0 : index
    %c0_11 = arith.constant 0 : index
    %14 = vector.load %arg7[%c0_10, %c0_11] : memref<1x512xf32, #tpu.memory_space<vmem>>, vector<1x512xf32>
    tpu.vector_store %arg7[%c0_10, %c0_11], %13 {strides = array<i32>} : memref<1x512xf32, #tpu.memory_space<vmem>>, vector<1x512xf32>,
    return
  }
  func.func @transform_0(%arg0: i32) -> i32 {
    %c0_i32 = arith.constant 0 : i32
    %c0_i32_0 = arith.constant 0 : i32
    return %c0_i32 : i32
  }
  func.func @transform_1(%arg0: i32) -> (i32, i32) {
    %c0_i32 = arith.constant 0 : i32
    %c0_i32_0 = arith.constant 0 : i32
    return %arg0, %c0_i32 : i32, i32
  }
  func.func @transform_2(%arg0: i32) -> (i32, i32) {
    %c0_i32 = arith.constant 0 : i32
    %c0_i32_0 = arith.constant 0 : i32
    return %arg0, %c0_i32 : i32, i32
  }
  func.func @transform_3(%arg0: i32) -> (i32, i32) {
    %c0_i32 = arith.constant 0 : i32
    %c0_i32_0 = arith.constant 0 : i32
    return %arg0, %c0_i32 : i32, i32
  }
  func.func @transform_4(%arg0: i32) -> (i32, i32) {
    %c0_i32 = arith.constant 0 : i32
    %c0_i32_0 = arith.constant 0 : i32
    return %arg0, %c0_i32 : i32, i32
  }
  func.func @transform_5(%arg0: i32) -> (i32, i32) {
    %c0_i32 = arith.constant 0 : i32
    %c0_i32_0 = arith.constant 0 : i32
    return %arg0, %c0_i32 : i32, i32
  }
  func.func @transform_6(%arg0: i32) -> (i32, i32) {
    %c0_i32 = arith.constant 0 : i32
    %c0_i32_0 = arith.constant 0 : i32
    return %arg0, %c0_i32 : i32, i32
  }
}

</mosaic_0001>

<bundles_post_ra>
// kernel: cross_scale_attention.1
= control target key start
LH: loop header
LB: loop body
LE: loop exit
PB: predicated region body
PF: predicated region fallthrough
CT: control target
= control target key end

     0   :  { %12 = vsyncpa [#allocation3], 0  ;;  %s148_s0 = inlined_call_operand.vmem [shape: f32[3], index: 0, kind: input, shape index: {}]   ;;  %s149_s1 = inlined_call_operand.vmem [shape: f32[4,512], index: 1, kind: input, shape index: {}]   ;;  %s150_s2 = inlined_call_operand.vmem [shape: f32[2,512], index: 2, kind: input, shape index: {}]   ;;  %s151_s3 = inlined_call_operand.vmem [shape: f32[1,512], index: 3, kind: input, shape index: {}]   ;;  %s152_s4 = inlined_call_operand.vmem [shape: f32[4,512], index: 4, kind: output, shape index: {0}]   ;;  %s153_s5 = inlined_call_operand.vmem [shape: f32[2,512], index: 5, kind: output, shape index: {1}]   ;;  %s154_s6 = inlined_call_operand.vmem [shape: f32[1,512], index: 6, kind: output, shape index: {2}]  }
   0x1   :  { %s19_s23 = sshll.u32 %s148_s0, 4  ;;  %s20_s23 = int_to_ptr.vmem [resolvable:$true] %s19_s23 }
   0x2   :  { %s71_s24 = scalar_lea.vmem %s20_s23, 16  ;;  %p76_p1 = scmp.lt.s32.totalorder %s20_s23, %s20_s23 }
   0x3   :  { %p72_p0 = scmp.ne.s32.totalorder %s20_s23, %s71_s24  ;;  %p77_p2 = scmp.lt.s32.totalorder %s71_s24, %s71_s24 }
   0x5   :  { %p78_p3 = por %p77_p2, %p76_p1 }
   0x7   :  { %p79_p4 = pnand %p78_p3, %p72_p0 }
   0x9   :  { %82 = shalt.err (!%p79_p4)
}
   0xa   :  { %s85_s25 = smov [#allocation2]  }
   0xb   :  { %22 = dma.vmem_to_smem %s20_s23, 16, %s85_s25, [#allocation3]  }
   0xc   :  { %83 = dma.done.wait [#allocation3], 16  }
   0xd   :  { %84 = vsyncadd [#allocation3], 4294967280 }
   0xe   :  { %32 = sfence }
   0xf   :  { %s35_s26 = sld [smem:[#allocation2]]  ;;  %v33_v0 = vld [vmem:[%s149_s1] sm:$0xff]  ;;  %v34_v1 = vld [vmem:[%s149_s1 + $0x8] sm:$0xff]  ;;  %v50_v2 = vlaneseq }
  0x10   :  { %s68_s27 = sld [smem:[#allocation2 + $0x1]]  ;;  %v41_v3 = vld [vmem:[%s150_s2] sm:$0xff] }
  0x11   :  { %s69_s28 = sld [smem:[#allocation2 + $0x2]]  ;;  %v46_v5 = vld [vmem:[%s151_s3] sm:$0xf]  ;;  %vm52_vm0 = vcmp.lt.s32.totalorder %v50_v2, 512 }
  0x15   :  { %v36_v4 = vstv %s35_s26 }
  0x16   :  { %v37_v6 = vmul.f32 %v36_v4, %v33_v0  ;;  %v38_v7 = vmul.f32 %v36_v4, %v34_v1  ;;  %v43_v8 = vstv %s68_s27 }
  0x17   :  { %v44_v9 = vmul.f32 %v43_v8, %v41_v3  ;;  %v48_v10 = vstv %s69_s28 }
  0x18   :  { %39 = vst [vmem:[%s152_s4] sm:$0xff] %v37_v6  ;;  %40 = vst [vmem:[%s152_s4 + $0x8] sm:$0xff] %v38_v7  ;;  %v49_v11 = vmul.f32 %v48_v10, %v46_v5 }
  0x19   :  { %45 = vst [vmem:[%s153_s5] sm:$0xff] %v44_v9 }
  0x1a   :  { %54 = vst.msk [vmem:[%s154_s6] sm:$0xf] %vm52_vm0, %v49_v11 }
  0x1b   :  { %67 = vsyncpa [#allocation3], 1 }

</bundles_post_ra>
